<compile_context>
chip_gen: v7x
topology: tpu7x:2x2x1
jax: 0.10.0
libtpu: 0.0.40
codegen_flags: <defaults>
</compile_context>

<pallas_src>
import jax
import jax.numpy as jnp
from jax.experimental import pallas as pl
from jax.experimental.pallas import tpu as pltpu

# ---------------- configuration (small, deterministic) ----------------
INPUT_DIM = 32
HIDDEN_DIMS = [32, 32]                   # readout dim == 2*input_dim == FEAT_DIM
NUM_RELATION = 6
NUM_NODES = 16
NUM_EDGES = 48
BATCH = 2
NUM_NEG = 4
FEAT_DIM = HIDDEN_DIMS[-1] + INPUT_DIM   # == 2 * INPUT_DIM == 64
DIMS = [INPUT_DIM] + list(HIDDEN_DIMS)

# packed-slab layout (all chunks have 64 rows; lane offsets 128-aligned)
SLAB_ROWS = 2 * INPUT_DIM                # 64 == FEAT_DIM == 2*hidden
SLAB_LANES = 768
SCORE_LANES = 128                        # lane-dense score output (col 0 = score)
OFF_WXA1, OFF_WXA2, OFF_WM1, OFF_WM2, OFF_WRO = 0, 128, 256, 384, 512
OFF_B1, OFF_B2, OFF_BM1, OFF_BM2, OFF_BRO = 0, 128, 256, 384, 512


# ======================= fused Pallas kernel =======================

def _nbfnet_fused_kernel(at_bd_ref,       # (B*R*N, B*N)  bf16  block-diag stacked A_r^T
                         bq_ref,          # (2, B*N, D0)  f32   [boundary ; query-per-node]
                         relrep_ref,      # (2, B*R*N, D) f32   per-layer relation embeddings
                         roadj_ref,       # (3*B*N, B*N)  bf16  masked [A11; A21; A12] blocks
                         w_ref,           # (64, 768)     bf16  packed weights
                         b_ref,           # (1, 768)      f32   packed biases
                         out_ref):        # (B*N, 128)    f32   col 0 = per-node score
    f32, bf16 = jnp.float32, jnp.bfloat16
    B, R, N, F = BATCH, NUM_RELATION, NUM_NODES, FEAT_DIM
    BN = B * N

    at_bd = at_bd_ref[...]
    boundary = bq_ref[0]                                           # (BN, D0) f32
    qrep = bq_ref[1]                                               # (BN, D0) f32

    def conv_layer(x, layer_idx, w_off, b_off, dout):
        # y[b*R*N + r*N + dst] = sum_src A[r, src, dst] * x[b*N + src]
        y = jnp.dot(at_bd, x.astype(bf16), preferred_element_type=f32)   # (B*R*N, Din)
        # distmult weighting applied AFTER the matmul (no (R,N,D) reshape relayout)
        z = relrep_ref[layer_idx] * y                                    # (B*R*N, Din) f32
        parts = []
        for b in range(B):                                               # static unroll
            acc = z[b * R * N:b * R * N + N]
            for r in range(1, R):
                s = b * R * N + r * N
                acc = acc + z[s:s + N]
            parts.append(acc)
        agg = jnp.concatenate(parts, axis=0) + boundary                  # + boundary self-loop
        xa = jnp.concatenate([x, agg], axis=-1).astype(bf16)             # (BN, 2*Din)
        h = (jnp.dot(xa, w_ref[:, w_off:w_off + dout],
                     preferred_element_type=f32)
             + b_ref[:, b_off:b_off + dout])
        return jnp.maximum(h, 0.0)                                       # ReLU update

    x = conv_layer(boundary, 0, OFF_WXA1, OFF_B1, DIMS[1])
    x = conv_layer(x, 1, OFF_WXA2, OFF_B2, DIMS[2])

    emb = jnp.concatenate([x, qrep], axis=-1)                            # (BN, F) f32

    # three masked 2-hop readouts in ONE matmul (row blocks ro11 / ro21 / ro12),
    # then ONE merged linear against [w11 | w21 | w12]
    ro_all = jnp.dot(roadj_ref[...], emb.astype(bf16),
                     preferred_element_type=f32)                         # (3BN, F)
    prod = (jnp.dot(ro_all.astype(bf16), w_ref[:, OFF_WRO:OFF_WRO + 3 * F],
                    preferred_element_type=f32)
            + b_ref[:, OFF_BRO:OFF_BRO + 3 * F])                         # (3BN, 3F)
    out11 = jnp.maximum(prod[0 * BN:1 * BN, 0 * F:1 * F], 0.0)
    out21 = jnp.maximum(prod[1 * BN:2 * BN, 1 * F:2 * F], 0.0)
    out12 = jnp.maximum(prod[2 * BN:3 * BN, 2 * F:3 * F], 0.0)
    feature = emb + out11 + out12 + out21                                # (BN, F)

    # scoring MLP: Linear -> ReLU -> Linear(., 1); last weight padded to 128 lanes
    h = jnp.maximum(
        jnp.dot(feature.astype(bf16), w_ref[:, OFF_WM1:OFF_WM1 + F],
                preferred_element_type=f32) + b_ref[:, OFF_BM1:OFF_BM1 + F], 0.0)
    score = (jnp.dot(h.astype(bf16), w_ref[:, OFF_WM2:OFF_WM2 + SCORE_LANES],
                     preferred_element_type=f32)
             + b_ref[:, OFF_BM2:OFF_BM2 + SCORE_LANES])                  # (BN, 128)
    out_ref[...] = score


def nbfnet_fused(at_bd, bq, rel_rep, ro_adj, w_slab, b_slab):
    bn = bq.shape[1]
    return pl.pallas_call(
        _nbfnet_fused_kernel,
        out_shape=jax.ShapeDtypeStruct((bn, SCORE_LANES), jnp.float32),
        in_specs=[pl.BlockSpec(memory_space=pltpu.MemorySpace.VMEM)] * 6,
        out_specs=pl.BlockSpec(memory_space=pltpu.MemorySpace.VMEM),
    )(at_bd, bq, rel_rep, ro_adj, w_slab, b_slab)


# ======================= parameters =======================

def init_params(key):
    def w(k, shape, scale=0.1):
        return scale * jax.random.normal(k, shape, dtype=jnp.float32)

    keys = iter(jax.random.split(key, 64))
    params = {}
    params["query_emb"] = w(next(keys), (NUM_RELATION, INPUT_DIM))
    layers = []
    for i in range(len(DIMS) - 1):
        din, dout = DIMS[i], DIMS[i + 1]
        layers.append({
            "wrel": w(next(keys), (DIMS[0], NUM_RELATION * din)),
            "brel": w(next(keys), (NUM_RELATION * din,)),
            "wx": w(next(keys), (din, dout)),
            "wa": w(next(keys), (din, dout)),
            "b": w(next(keys), (1, dout)),
        })
    params["layers"] = layers
    for name in ("11", "12", "21"):
        params[f"w{name}"] = w(next(keys), (FEAT_DIM, FEAT_DIM))
        params[f"b{name}"] = w(next(keys), (1, FEAT_DIM))
    params["wm1"] = w(next(keys), (FEAT_DIM, FEAT_DIM))
    params["bm1"] = w(next(keys), (1, FEAT_DIM))
    params["wm2"] = w(next(keys), (FEAT_DIM, 1))
    params["bm2"] = w(next(keys), (1, 1))
    return params


def pack_params(params):
    """Pack all weights into one bf16 slab and all biases into one f32 slab."""
    F = FEAT_DIM
    lp1, lp2 = params["layers"]
    w = jnp.zeros((SLAB_ROWS, SLAB_LANES), jnp.float32)
    w = w.at[:, OFF_WXA1:OFF_WXA1 + DIMS[1]].set(
        jnp.concatenate([lp1["wx"], lp1["wa"]], axis=0))          # (2*D0, D1)
    w = w.at[:, OFF_WXA2:OFF_WXA2 + DIMS[2]].set(
        jnp.concatenate([lp2["wx"], lp2["wa"]], axis=0))          # (2*D1, D2)
    w = w.at[:, OFF_WM1:OFF_WM1 + F].set(params["wm1"])
    w = w.at[:, OFF_WM2:OFF_WM2 + 1].set(params["wm2"])           # padded to 128 lanes
    w = w.at[:, OFF_WRO:OFF_WRO + 3 * F].set(
        jnp.concatenate([params["w11"], params["w21"], params["w12"]], axis=1))

    b = jnp.zeros((1, SLAB_LANES), jnp.float32)
    b = b.at[:, OFF_B1:OFF_B1 + DIMS[1]].set(lp1["b"])
    b = b.at[:, OFF_B2:OFF_B2 + DIMS[2]].set(lp2["b"])
    b = b.at[:, OFF_BM1:OFF_BM1 + F].set(params["bm1"])
    b = b.at[:, OFF_BM2:OFF_BM2 + SCORE_LANES].set(
        jnp.broadcast_to(params["bm2"], (1, SCORE_LANES)))
    b = b.at[:, OFF_BRO:OFF_BRO + 3 * F].set(
        jnp.concatenate([params["b11"], params["b21"], params["b12"]], axis=1))
    return w.astype(jnp.bfloat16), b


# ======================= forward (XLA glue + fused kernel) =======================

def nbfnet_forward(params, edge_index, edge_type, batch):
    N, R, B, D0 = NUM_NODES, NUM_RELATION, BATCH, INPUT_DIM
    h_index = batch[..., 0]
    t_index = batch[..., 1]
    r_index = batch[..., 2]

    # negative_sample_to_tail
    is_t_neg = jnp.all(h_index == h_index[:, :1], axis=-1, keepdims=True)
    h_index, t_index = (jnp.where(is_t_neg, h_index, t_index),
                        jnp.where(is_t_neg, t_index, h_index))
    r_index = jnp.where(is_t_neg, r_index, r_index + R // 2)

    h0 = h_index[:, 0]
    r0 = r_index[:, 0]

    query = params["query_emb"][r0]                                   # (B, D0)
    boundary = jnp.zeros((B, N, D0), jnp.float32)
    boundary = boundary.at[jnp.arange(B), h0].add(query)

    eyeB = jnp.eye(B, dtype=jnp.float32)

    # per-relation transposed adjacency stacked over relations, block-diag over batch:
    # at_bd[b*R*N + r*N + dst, b*N + src] = A[r, src, dst]
    src, dst = edge_index[0], edge_index[1]
    A = jnp.zeros((R, N, N), jnp.float32).at[edge_type, src, dst].add(1.0)
    At_rows = jnp.transpose(A, (0, 2, 1)).reshape(R * N, N)          # (R*N, N), rows r*N+dst
    at_bd = (eyeB[:, None, :, None] * At_rows[None, :, None, :]
             ).reshape(B * R * N, B * N).astype(jnp.bfloat16)

    # per-layer relation embeddings (tiny linears kept in XLA), expanded to rows
    lp1, lp2 = params["layers"]
    rel1 = (query @ lp1["wrel"] + lp1["brel"]).reshape(B, R, DIMS[0])
    rel2 = (query @ lp2["wrel"] + lp2["brel"]).reshape(B, R, DIMS[1])

    def rep(rel):  # (B, R, D) -> (B*R*N, D) matching the at_bd row order
        d = rel.shape[-1]
        return jnp.broadcast_to(rel[:, :, None, :], (B, R, N, d)).reshape(B * R * N, d)

    rel_rep = jnp.stack([rep(rel1), rep(rel2)], axis=0)               # (2, B*R*N, D0)

    bq = jnp.stack([
        boundary.reshape(B * N, D0),
        jnp.broadcast_to(query[:, None, :], (B, N, D0)).reshape(B * N, D0),
    ], axis=0)                                                        # (2, B*N, D0)

    # forward-relation boolean adjacency and its 2-hop reachability
    # (matches original: forward relations are edge_type < (R - 1) // 2)
    fwd = (edge_type < (R - 1) // 2).astype(jnp.float32)
    adj = jnp.zeros((N, N), jnp.float32).at[src, dst].add(fwd)
    adjb = (adj > 0).astype(jnp.float32)
    adj2b = ((adjb @ adjb) > 0).astype(jnp.float32)
    mask1 = adjb[h0]                                                  # (B, N) 1-hop of head
    mask2 = adj2b[h0]                                                 # (B, N) 2-hop of head

    def bd(blk):  # (B, N, N) -> (B*N, B*N) block-diagonal
        return (eyeB[:, None, :, None] * blk[:, :, None, :]).reshape(B * N, B * N)

    ro_adj = jnp.concatenate([
        bd(adjb.T[None, :, :] * mask1[:, None, :]),    # readout 11
        bd(adjb.T[None, :, :] * mask2[:, None, :]),    # readout 21
        bd(adj2b.T[None, :, :] * mask1[:, None, :]),   # readout 12
    ], axis=0).astype(jnp.bfloat16)                                   # (3*B*N, B*N)

    w_slab, b_slab = pack_params(params)

    score_mat = nbfnet_fused(at_bd, bq, rel_rep, ro_adj, w_slab, b_slab)  # (B*N, 128)
    node_scores = score_mat[:, 0].reshape(B, N)                       # (B, N)
    score = jnp.take_along_axis(node_scores, t_index, axis=1)         # (B, num_neg)
    return score


# ======================= main =======================

if __name__ == "__main__":
    key = jax.random.PRNGKey(0)
    k_par, k_src, k_dst, k_rel, k_h, k_r, k_t = jax.random.split(key, 7)

    params = init_params(k_par)

    # synthetic graph
    edge_src = jax.random.randint(k_src, (NUM_EDGES,), 0, NUM_NODES, dtype=jnp.int32)
    edge_dst = jax.random.randint(k_dst, (NUM_EDGES,), 0, NUM_NODES, dtype=jnp.int32)
    edge_index = jnp.stack([edge_src, edge_dst], axis=0)              # (2, E)
    edge_type = jax.random.randint(k_rel, (NUM_EDGES,), 0, NUM_RELATION, dtype=jnp.int32)

    # batch of (h, t, r) triples; h and r constant per row (tail-negative sampling)
    h0 = jax.random.randint(k_h, (BATCH,), 0, NUM_NODES, dtype=jnp.int32)
    r0 = jax.random.randint(k_r, (BATCH,), 0, NUM_RELATION // 2, dtype=jnp.int32)
    t = jax.random.randint(k_t, (BATCH, NUM_NEG), 0, NUM_NODES, dtype=jnp.int32)
    batch = jnp.stack([jnp.broadcast_to(h0[:, None], (BATCH, NUM_NEG)),
                       t,
                       jnp.broadcast_to(r0[:, None], (BATCH, NUM_NEG))], axis=-1)

    fwd_fn = jax.jit(nbfnet_forward)
    score = fwd_fn(params, edge_index, edge_type, batch)
    jax.block_until_ready(score)
    assert score.shape == (BATCH, NUM_NEG) and score.dtype == jnp.float32
    print("KERNEL_OK")
</pallas_src>

<mosaic_0001>
module attributes {stable_mosaic.version = 11 : i64} {
  func.func private @main(%arg0: i32) attributes {dimension_semantics = [#tpu.dimension_semantics<core_parallel>], iteration_bounds = array<i64: 2>, tpu.core_type = #tpu.core_type<sc_scalar_subcore>, window_params = []} {
    return
  }
}

module attributes {stable_mosaic.version = 11 : i64} {
  func.func private @main(%arg0: i32) attributes {dimension_semantics = [#tpu.dimension_semantics<core_parallel>], iteration_bounds = array<i64: 2>, tpu.core_type = #tpu.core_type<sc_scalar_subcore>, window_params = []} {
    return
  }
}

module attributes {stable_mosaic.version = 11 : i64} {
  func.func @_nbfnet_fused_kernel(%arg0: memref<192x32xbf16, #tpu.memory_space<vmem>>, %arg1: memref<2x32x32xf32, #tpu.memory_space<vmem>>, %arg2: memref<2x192x32xf32, #tpu.memory_space<vmem>>, %arg3: memref<96x32xbf16, #tpu.memory_space<vmem>>, %arg4: memref<64x768xbf16, #tpu.memory_space<vmem>>, %arg5: memref<1x768xf32, #tpu.memory_space<vmem>>, %arg6: memref<32x128xf32, #tpu.memory_space<vmem>>) attributes {dimension_semantics = [], scalar_prefetch = 0 : i64, scratch_operands = 0 : i64, tpu.core_type = #tpu.core_type<tc>} {
    %c0 = arith.constant 0 : index
    %c0_0 = arith.constant 0 : index
    %0 = vector.load %arg0[%c0, %c0_0] : memref<192x32xbf16, #tpu.memory_space<vmem>>, vector<192x32xbf16>
    %c0_1 = arith.constant 0 : index
    %c0_2 = arith.constant 0 : index
    %c0_3 = arith.constant 0 : index
    %1 = vector.load %arg1[%c0_1, %c0_2, %c0_3] : memref<2x32x32xf32, #tpu.memory_space<vmem>>, vector<1x32x32xf32>
    %2 = vector.shape_cast %1 : vector<1x32x32xf32> to vector<32x32xf32>
    %c1 = arith.constant 1 : index
    %c0_4 = arith.constant 0 : index
    %c0_5 = arith.constant 0 : index
    %3 = vector.load %arg1[%c1, %c0_4, %c0_5] : memref<2x32x32xf32, #tpu.memory_space<vmem>>, vector<1x32x32xf32>
    %4 = vector.shape_cast %3 : vector<1x32x32xf32> to vector<32x32xf32>
    %5 = arith.truncf %2 : vector<32x32xf32> to vector<32x32xbf16>
    %cst = arith.constant dense<0.000000e+00> : vector<192x32xf32>
    %6 = tpu.matmul %0, %5, %cst {dimension_numbers = #tpu.dot_dimension_numbers<[1], [0], [0], [1], [0, 0, 1, 1], [], []>} : vector<192x32xbf16>, vector<32x32xbf16>, vector<192x32xf32> -> vector<192x32xf32>
    %c0_6 = arith.constant 0 : index
    %c0_7 = arith.constant 0 : index
    %c0_8 = arith.constant 0 : index
    %7 = vector.load %arg2[%c0_6, %c0_7, %c0_8] : memref<2x192x32xf32, #tpu.memory_space<vmem>>, vector<1x192x32xf32>
    %8 = vector.shape_cast %7 : vector<1x192x32xf32> to vector<192x32xf32>
    %9 = arith.mulf %8, %6 : vector<192x32xf32>
    %10 = vector.extract_strided_slice %9 {offsets = [0, 0], sizes = [16, 32], strides = [1, 1]} : vector<192x32xf32> to vector<16x32xf32>
    %11 = vector.extract_strided_slice %9 {offsets = [16, 0], sizes = [16, 32], strides = [1, 1]} : vector<192x32xf32> to vector<16x32xf32>
    %12 = arith.addf %10, %11 : vector<16x32xf32>
    %13 = vector.extract_strided_slice %9 {offsets = [32, 0], sizes = [16, 32], strides = [1, 1]} : vector<192x32xf32> to vector<16x32xf32>
    %14 = arith.addf %12, %13 : vector<16x32xf32>
    %15 = vector.extract_strided_slice %9 {offsets = [48, 0], sizes = [16, 32], strides = [1, 1]} : vector<192x32xf32> to vector<16x32xf32>
    %16 = arith.addf %14, %15 : vector<16x32xf32>
    %17 = vector.extract_strided_slice %9 {offsets = [64, 0], sizes = [16, 32], strides = [1, 1]} : vector<192x32xf32> to vector<16x32xf32>
    %18 = arith.addf %16, %17 : vector<16x32xf32>
    %19 = vector.extract_strided_slice %9 {offsets = [80, 0], sizes = [16, 32], strides = [1, 1]} : vector<192x32xf32> to vector<16x32xf32>
    %20 = arith.addf %18, %19 : vector<16x32xf32>
    %21 = vector.extract_strided_slice %9 {offsets = [96, 0], sizes = [16, 32], strides = [1, 1]} : vector<192x32xf32> to vector<16x32xf32>
    %22 = vector.extract_strided_slice %9 {offsets = [112, 0], sizes = [16, 32], strides = [1, 1]} : vector<192x32xf32> to vector<16x32xf32>
    %23 = arith.addf %21, %22 : vector<16x32xf32>
    %24 = vector.extract_strided_slice %9 {offsets = [128, 0], sizes = [16, 32], strides = [1, 1]} : vector<192x32xf32> to vector<16x32xf32>
    %25 = arith.addf %23, %24 : vector<16x32xf32>
    %26 = vector.extract_strided_slice %9 {offsets = [144, 0], sizes = [16, 32], strides = [1, 1]} : vector<192x32xf32> to vector<16x32xf32>
    %27 = arith.addf %25, %26 : vector<16x32xf32>
    %28 = vector.extract_strided_slice %9 {offsets = [160, 0], sizes = [16, 32], strides = [1, 1]} : vector<192x32xf32> to vector<16x32xf32>
    %29 = arith.addf %27, %28 : vector<16x32xf32>
    %30 = vector.extract_strided_slice %9 {offsets = [176, 0], sizes = [16, 32], strides = [1, 1]} : vector<192x32xf32> to vector<16x32xf32>
    %31 = arith.addf %29, %30 : vector<16x32xf32>
    %32 = tpu.concatenate %20, %31 in 0 : vector<16x32xf32>, vector<16x32xf32> -> vector<32x32xf32>
    %33 = arith.addf %32, %2 : vector<32x32xf32>
    %34 = tpu.concatenate %2, %33 in 1 : vector<32x32xf32>, vector<32x32xf32> -> vector<32x64xf32>
    %35 = arith.truncf %34 : vector<32x64xf32> to vector<32x64xbf16>
    %c0_9 = arith.constant 0 : index
    %c0_10 = arith.constant 0 : index
    %36 = vector.load %arg4[%c0_9, %c0_10] : memref<64x768xbf16, #tpu.memory_space<vmem>>, vector<64x32xbf16>
    %cst_11 = arith.constant dense<0.000000e+00> : vector<32x32xf32>
    %37 = tpu.matmul %35, %36, %cst_11 {dimension_numbers = #tpu.dot_dimension_numbers<[1], [0], [0], [1], [0, 0, 1, 1], [], []>} : vector<32x64xbf16>, vector<64x32xbf16>, vector<32x32xf32> -> vector<32x32xf32>
    %c0_12 = arith.constant 0 : index
    %c0_13 = arith.constant 0 : index
    %38 = vector.load %arg5[%c0_12, %c0_13] : memref<1x768xf32, #tpu.memory_space<vmem>>, vector<1x32xf32>
    %39 = vector.broadcast %38 : vector<1x32xf32> to vector<32x32xf32>
    %40 = arith.addf %37, %39 : vector<32x32xf32>
    %cst_14 = arith.constant 0.000000e+00 : f32
    %41 = vector.broadcast %cst_14 : f32 to vector<32x32xf32>
    %42 = arith.maximumf %40, %41 : vector<32x32xf32>
    %43 = arith.truncf %42 : vector<32x32xf32> to vector<32x32xbf16>
    %cst_15 = arith.constant dense<0.000000e+00> : vector<192x32xf32>
    %44 = tpu.matmul %0, %43, %cst_15 {dimension_numbers = #tpu.dot_dimension_numbers<[1], [0], [0], [1], [0, 0, 1, 1], [], []>} : vector<192x32xbf16>, vector<32x32xbf16>, vector<192x32xf32> -> vector<192x32xf32>
    %c1_16 = arith.constant 1 : index
    %c0_17 = arith.constant 0 : index
    %c0_18 = arith.constant 0 : index
    %45 = vector.load %arg2[%c1_16, %c0_17, %c0_18] : memref<2x192x32xf32, #tpu.memory_space<vmem>>, vector<1x192x32xf32>
    %46 = vector.shape_cast %45 : vector<1x192x32xf32> to vector<192x32xf32>
    %47 = arith.mulf %46, %44 : vector<192x32xf32>
    %48 = vector.extract_strided_slice %47 {offsets = [0, 0], sizes = [16, 32], strides = [1, 1]} : vector<192x32xf32> to vector<16x32xf32>
    %49 = vector.extract_strided_slice %47 {offsets = [16, 0], sizes = [16, 32], strides = [1, 1]} : vector<192x32xf32> to vector<16x32xf32>
    %50 = arith.addf %48, %49 : vector<16x32xf32>
    %51 = vector.extract_strided_slice %47 {offsets = [32, 0], sizes = [16, 32], strides = [1, 1]} : vector<192x32xf32> to vector<16x32xf32>
    %52 = arith.addf %50, %51 : vector<16x32xf32>
    %53 = vector.extract_strided_slice %47 {offsets = [48, 0], sizes = [16, 32], strides = [1, 1]} : vector<192x32xf32> to vector<16x32xf32>
    %54 = arith.addf %52, %53 : vector<16x32xf32>
    %55 = vector.extract_strided_slice %47 {offsets = [64, 0], sizes = [16, 32], strides = [1, 1]} : vector<192x32xf32> to vector<16x32xf32>
    %56 = arith.addf %54, %55 : vector<16x32xf32>
    %57 = vector.extract_strided_slice %47 {offsets = [80, 0], sizes = [16, 32], strides = [1, 1]} : vector<192x32xf32> to vector<16x32xf32>
    %58 = arith.addf %56, %57 : vector<16x32xf32>
    %59 = vector.extract_strided_slice %47 {offsets = [96, 0], sizes = [16, 32], strides = [1, 1]} : vector<192x32xf32> to vector<16x32xf32>
    %60 = vector.extract_strided_slice %47 {offsets = [112, 0], sizes = [16, 32], strides = [1, 1]} : vector<192x32xf32> to vector<16x32xf32>
    %61 = arith.addf %59, %60 : vector<16x32xf32>
    %62 = vector.extract_strided_slice %47 {offsets = [128, 0], sizes = [16, 32], strides = [1, 1]} : vector<192x32xf32> to vector<16x32xf32>
    %63 = arith.addf %61, %62 : vector<16x32xf32>
    %64 = vector.extract_strided_slice %47 {offsets = [144, 0], sizes = [16, 32], strides = [1, 1]} : vector<192x32xf32> to vector<16x32xf32>
    %65 = arith.addf %63, %64 : vector<16x32xf32>
    %66 = vector.extract_strided_slice %47 {offsets = [160, 0], sizes = [16, 32], strides = [1, 1]} : vector<192x32xf32> to vector<16x32xf32>
    %67 = arith.addf %65, %66 : vector<16x32xf32>
    %68 = vector.extract_strided_slice %47 {offsets = [176, 0], sizes = [16, 32], strides = [1, 1]} : vector<192x32xf32> to vector<16x32xf32>
    %69 = arith.addf %67, %68 : vector<16x32xf32>
    %70 = tpu.concatenate %58, %69 in 0 : vector<16x32xf32>, vector<16x32xf32> -> vector<32x32xf32>
    %71 = arith.addf %70, %2 : vector<32x32xf32>
    %72 = tpu.concatenate %42, %71 in 1 : vector<32x32xf32>, vector<32x32xf32> -> vector<32x64xf32>
    %73 = arith.truncf %72 : vector<32x64xf32> to vector<32x64xbf16>
    %c0_19 = arith.constant 0 : index
    %c128 = arith.constant 128 : index
    %74 = vector.load %arg4[%c0_19, %c128] : memref<64x768xbf16, #tpu.memory_space<vmem>>, vector<64x32xbf16>
    %cst_20 = arith.constant dense<0.000000e+00> : vector<32x32xf32>
    %75 = tpu.matmul %73, %74, %cst_20 {dimension_numbers = #tpu.dot_dimension_numbers<[1], [0], [0], [1], [0, 0, 1, 1], [], []>} : vector<32x64xbf16>, vector<64x32xbf16>, vector<32x32xf32> -> vector<32x32xf32>
    %c0_21 = arith.constant 0 : index
    %c128_22 = arith.constant 128 : index
    %76 = vector.load %arg5[%c0_21, %c128_22] : memref<1x768xf32, #tpu.memory_space<vmem>>, vector<1x32xf32>
    %77 = vector.broadcast %76 : vector<1x32xf32> to vector<32x32xf32>
    %78 = arith.addf %75, %77 : vector<32x32xf32>
    %cst_23 = arith.constant 0.000000e+00 : f32
    %79 = vector.broadcast %cst_23 : f32 to vector<32x32xf32>
    %80 = arith.maximumf %78, %79 : vector<32x32xf32>
    %81 = tpu.concatenate %80, %4 in 1 : vector<32x32xf32>, vector<32x32xf32> -> vector<32x64xf32>
    %c0_24 = arith.constant 0 : index
    %c0_25 = arith.constant 0 : index
    %82 = vector.load %arg3[%c0_24, %c0_25] : memref<96x32xbf16, #tpu.memory_space<vmem>>, vector<96x32xbf16>
    %83 = arith.truncf %81 : vector<32x64xf32> to vector<32x64xbf16>
    %cst_26 = arith.constant dense<0.000000e+00> : vector<96x64xf32>
    %84 = tpu.matmul %82, %83, %cst_26 {dimension_numbers = #tpu.dot_dimension_numbers<[1], [0], [0], [1], [0, 0, 1, 1], [], []>} : vector<96x32xbf16>, vector<32x64xbf16>, vector<96x64xf32> -> vector<96x64xf32>
    %85 = arith.truncf %84 : vector<96x64xf32> to vector<96x64xbf16>
    %c0_27 = arith.constant 0 : index
    %c512 = arith.constant 512 : index
    %86 = vector.load %arg4[%c0_27, %c512] : memref<64x768xbf16, #tpu.memory_space<vmem>>, vector<64x192xbf16>
    %cst_28 = arith.constant dense<0.000000e+00> : vector<96x192xf32>
    %87 = tpu.matmul %85, %86, %cst_28 {dimension_numbers = #tpu.dot_dimension_numbers<[1], [0], [0], [1], [0, 0, 1, 1], [], []>} : vector<96x64xbf16>, vector<64x192xbf16>, vector<96x192xf32> -> vector<96x192xf32>
    %c0_29 = arith.constant 0 : index
    %c512_30 = arith.constant 512 : index
    %88 = vector.load %arg5[%c0_29, %c512_30] : memref<1x768xf32, #tpu.memory_space<vmem>>, vector<1x192xf32>
    %89 = vector.broadcast %88 : vector<1x192xf32> to vector<96x192xf32>
    %90 = arith.addf %87, %89 : vector<96x192xf32>
    %91 = vector.extract_strided_slice %90 {offsets = [0, 0], sizes = [32, 64], strides = [1, 1]} : vector<96x192xf32> to vector<32x64xf32>
    %cst_31 = arith.constant 0.000000e+00 : f32
    %92 = vector.broadcast %cst_31 : f32 to vector<32x64xf32>
    %93 = arith.maximumf %91, %92 : vector<32x64xf32>
    %94 = vector.extract_strided_slice %90 {offsets = [32, 64], sizes = [32, 64], strides = [1, 1]} : vector<96x192xf32> to vector<32x64xf32>
    %cst_32 = arith.constant 0.000000e+00 : f32
    %95 = vector.broadcast %cst_32 : f32 to vector<32x64xf32>
    %96 = arith.maximumf %94, %95 : vector<32x64xf32>
    %97 = vector.extract_strided_slice %90 {offsets = [64, 128], sizes = [32, 64], strides = [1, 1]} : vector<96x192xf32> to vector<32x64xf32>
    %cst_33 = arith.constant 0.000000e+00 : f32
    %98 = vector.broadcast %cst_33 : f32 to vector<32x64xf32>
    %99 = arith.maximumf %97, %98 : vector<32x64xf32>
    %100 = arith.addf %81, %93 : vector<32x64xf32>
    %101 = arith.addf %100, %99 : vector<32x64xf32>
    %102 = arith.addf %101, %96 : vector<32x64xf32>
    %103 = arith.truncf %102 : vector<32x64xf32> to vector<32x64xbf16>
    %c0_34 = arith.constant 0 : index
    %c256 = arith.constant 256 : index
    %104 = vector.load %arg4[%c0_34, %c256] : memref<64x768xbf16, #tpu.memory_space<vmem>>, vector<64x64xbf16>
    %cst_35 = arith.constant dense<0.000000e+00> : vector<32x64xf32>
    %105 = tpu.matmul %103, %104, %cst_35 {dimension_numbers = #tpu.dot_dimension_numbers<[1], [0], [0], [1], [0, 0, 1, 1], [], []>} : vector<32x64xbf16>, vector<64x64xbf16>, vector<32x64xf32> -> vector<32x64xf32>
    %c0_36 = arith.constant 0 : index
    %c256_37 = arith.constant 256 : index
    %106 = vector.load %arg5[%c0_36, %c256_37] : memref<1x768xf32, #tpu.memory_space<vmem>>, vector<1x64xf32>
    %107 = vector.broadcast %106 : vector<1x64xf32> to vector<32x64xf32>
    %108 = arith.addf %105, %107 : vector<32x64xf32>
    %cst_38 = arith.constant 0.000000e+00 : f32
    %109 = vector.broadcast %cst_38 : f32 to vector<32x64xf32>
    %110 = arith.maximumf %108, %109 : vector<32x64xf32>
    %111 = arith.truncf %110 : vector<32x64xf32> to vector<32x64xbf16>
    %c0_39 = arith.constant 0 : index
    %c384 = arith.constant 384 : index
    %112 = vector.load %arg4[%c0_39, %c384] : memref<64x768xbf16, #tpu.memory_space<vmem>>, vector<64x128xbf16>
    %cst_40 = arith.constant dense<0.000000e+00> : vector<32x128xf32>
    %113 = tpu.matmul %111, %112, %cst_40 {dimension_numbers = #tpu.dot_dimension_numbers<[1], [0], [0], [1], [0, 0, 1, 1], [], []>} : vector<32x64xbf16>, vector<64x128xbf16>, vector<32x128xf32> -> vector<32x128xf32>
    %c0_41 = arith.constant 0 : index
    %c384_42 = arith.constant 384 : index
    %114 = vector.load %arg5[%c0_41, %c384_42] : memref<1x768xf32, #tpu.memory_space<vmem>>, vector<1x128xf32>
    %115 = vector.broadcast %114 : vector<1x128xf32> to vector<32x128xf32>
    %116 = arith.addf %113, %115 : vector<32x128xf32>
    %c0_43 = arith.constant 0 : index
    %c0_44 = arith.constant 0 : index
    %117 = vector.load %arg6[%c0_43, %c0_44] : memref<32x128xf32, #tpu.memory_space<vmem>>, vector<32x128xf32>
    tpu.vector_store %arg6[%c0_43, %c0_44], %116 {strides = array<i32>} : memref<32x128xf32, #tpu.memory_space<vmem>>, vector<32x128xf32>,
    return
  }
}

</mosaic_0001>

<bundles_post_ra>
// kernel: mul.53
= control target key start
LH: loop header
LB: loop body
LE: loop exit
PB: predicated region body
PF: predicated region fallthrough
CT: control target
= control target key end

     0   :  { %vm4_vm0 = vcmask 1047556   ;;  %s155_s14 = smov 64   ;;  %s156_s19 = smov 80   ;;  %vm6_vm1 = vcmask 130048   ;;  %vm25_vm2 = vcmask 786048   ;;  %vm46_vm3 = vcmask 654848   ;;  %s292_s0 = inlined_call_operand.vmem [shape: f32[6,16,16], index: 0, kind: input, shape index: {}]   ;;  %s293_s1 = inlined_call_operand.vmem [shape: f32[96,16], index: 1, kind: output, shape index: {}]  }
   0x1   :  { %v130_v0 = vld [vmem:[%s292_s0 + $0x4] ss:$8 sm:$0xf]   ;;  %v125_v3 = vld [vmem:[%s292_s0 + $0x5] ss:$8 sm:$0xf]  }
   0x2   :  { %v131_v1 = vld [vmem:[%s292_s0 + $0x4] ss:$8 sm:$0xf0]   ;;  %v126_v4 = vld [vmem:[%s292_s0 + $0x5] ss:$8 sm:$0xf0]  }
   0x3   :  { %v43_v2 = vsel %vm4_vm0, %v131_v1, %v130_v0  ;;  %v22_v5 = vsel %vm4_vm0, %v126_v4, %v125_v3  ;;  %v132_v6 = vld [vmem:[%s292_s0 + $0x44] ss:$8 sm:$0xf]   ;;  %v127_v9 = vld [vmem:[%s292_s0 + $0x45] ss:$8 sm:$0xf]  }
   0x4   :  { %44 = vrot.lane.b32.xlu1 %v43_v2, %s155_s14  ;;  %v133_v7 = vld [vmem:[%s292_s0 + $0x44] ss:$8 sm:$0xf0]   ;;  %23 = vrot.lane.b32.xlu0 %v22_v5, %s156_s19  ;;  %v128_v10 = vld [vmem:[%s292_s0 + $0x45] ss:$8 sm:$0xf0]  }
   0x5   :  { %v53_v8 = vsel %vm4_vm0, %v133_v7, %v132_v6  ;;  %v32_v11 = vsel %vm4_vm0, %v128_v10, %v127_v9  ;;  %v137_v12 = vld [vmem:[%s292_s0 + $0x43] ss:$8 sm:$0xf]   ;;  %v142_v18 = vld [vmem:[%s292_s0 + $0x42] ss:$8 sm:$0xf]  }
   0x6   :  { %v138_v13 = vld [vmem:[%s292_s0 + $0x43] ss:$8 sm:$0xf0]   ;;  %v143_v19 = vld [vmem:[%s292_s0 + $0x42] ss:$8 sm:$0xf0]  }
   0x7   :  { %v135_v14 = vld [vmem:[%s292_s0 + $0x3] ss:$8 sm:$0xf]   ;;  %v74_v16 = vsel %vm4_vm0, %v138_v13, %v137_v12  ;;  %v140_v20 = vld [vmem:[%s292_s0 + $0x2] ss:$8 sm:$0xf]   ;;  %v95_v24 = vsel %vm4_vm0, %v143_v19, %v142_v18 }
   0x8   :  { %54 = vrot.lane.b32.xlu1 %v53_v8, %s155_s14  ;;  %v136_v15 = vld [vmem:[%s292_s0 + $0x3] ss:$8 sm:$0xf0]   ;;  %33 = vrot.lane.b32.xlu0 %v32_v11, %s156_s19  ;;  %v141_v21 = vld [vmem:[%s292_s0 + $0x2] ss:$8 sm:$0xf0]  }
   0x9   :  { %v64_v17 = vsel %vm4_vm0, %v136_v15, %v135_v14  ;;  %s157_s11 = smov 48   ;;  %v147_v22 = vld [vmem:[%s292_s0 + $0x41] ss:$8 sm:$0xf]   ;;  %v85_v27 = vsel %vm4_vm0, %v141_v21, %v140_v20  ;;  %s158_s29 = smov 32   ;;  %vm67_vm4 = vcmask 523648  }
   0xa   :  { %v148_v23 = vld [vmem:[%s292_s0 + $0x41] ss:$8 sm:$0xf0]   ;;  %v2_v25 = vld [vmem:[%s292_s0] ss:$8 sm:$0xf]  }
   0xb   :  { %v3_v26 = vld [vmem:[%s292_s0] ss:$8 sm:$0xf0]   ;;  %v145_v31 = vld [vmem:[%s292_s0 + $0x1] ss:$8 sm:$0xf]   ;;  %v116_v34 = vsel %vm4_vm0, %v148_v23, %v147_v22 }
   0xc   :  { %75 = vrot.lane.b32.xlu1 %v74_v16, %s157_s11  ;;  %65 = vrot.lane.b32.xlu0 %v64_v17, %s157_s11  ;;  %v5_v28 = vsel %vm4_vm0, %v3_v26, %v2_v25  ;;  %v122_v29 = vld [vmem:[%s292_s0 + $0x40] ss:$8 sm:$0xf]   ;;  %v146_v32 = vld [vmem:[%s292_s0 + $0x1] ss:$8 sm:$0xf0]  }
   0xd   :  { %v123_v30 = vld [vmem:[%s292_s0 + $0x40] ss:$8 sm:$0xf0]   ;;  %7 = vst.msk [vmem:[%s293_s1] sm:$0xff] %vm6_vm1, %v5_v28   ;;  %v106_v35 = vsel %vm4_vm0, %v146_v32, %v145_v31  ;;  %s159_s3 = smov 16   ;;  %vm88_vm5 = vcmask 392448  }
   0xe   :  { %v13_v33 = vsel %vm4_vm0, %v123_v30, %v122_v29  ;;  %vm109_vm6 = vcmask 261248  }
   0xf   :  { %124 = vst.msk [vmem:[%s293_s1 + $0x8] sm:$0xff] %vm6_vm1, %v13_v33  }
  0x10   :  { %96 = vrot.lane.b32.xlu1 %v95_v24, %s158_s29  ;;  %86 = vrot.lane.b32.xlu0 %v85_v27, %s158_s29 }
  0x14   :  { %117 = vrot.lane.b32.xlu1 %v116_v34, %s159_s3  ;;  %107 = vrot.lane.b32.xlu0 %v106_v35, %s159_s3 }
  0x76   :  { %v45_v36 = vpop.permute.xlu1 %44   ;;  %v24_v37 = vpop.permute.xlu0 %23  }
  0x77   :  { %26 = vst.msk [vmem:[%s293_s1] sm:$0xff] %vm25_vm2, %v24_v37  }
  0x78   :  { %47 = vst.msk [vmem:[%s293_s1] sm:$0xff] %vm46_vm3, %v45_v36  }
  0x7a   :  { %v55_v38 = vpop.permute.xlu1 %54   ;;  %v34_v39 = vpop.permute.xlu0 %33  }
  0x7b   :  { %129 = vst.msk [vmem:[%s293_s1 + $0x8] sm:$0xff] %vm25_vm2, %v34_v39  }
  0x7c   :  { %134 = vst.msk [vmem:[%s293_s1 + $0x8] sm:$0xff] %vm46_vm3, %v55_v38  }
  0x7e   :  { %v76_v40 = vpop.permute.xlu1 %75   ;;  %v66_v41 = vpop.permute.xlu0 %65  }
  0x7f   :  { %139 = vst.msk [vmem:[%s293_s1 + $0x8] sm:$0xff] %vm67_vm4, %v76_v40   ;;  %68 = vst.msk [vmem:[%s293_s1] sm:$0xff] %vm67_vm4, %v66_v41  }
  0x82   :  { %v97_v42 = vpop.permute.xlu1 %96   ;;  %v87_v43 = vpop.permute.xlu0 %86  }
  0x83   :  { %144 = vst.msk [vmem:[%s293_s1 + $0x8] sm:$0xff] %vm88_vm5, %v97_v42   ;;  %89 = vst.msk [vmem:[%s293_s1] sm:$0xff] %vm88_vm5, %v87_v43  }
  0x86   :  { %v118_v44 = vpop.permute.xlu1 %117   ;;  %v108_v45 = vpop.permute.xlu0 %107  }
  0x87   :  { %149 = vst.msk [vmem:[%s293_s1 + $0x8] sm:$0xff] %vm109_vm6, %v118_v44   ;;  %110 = vst.msk [vmem:[%s293_s1] sm:$0xff] %vm109_vm6, %v108_v45  }

// kernel: squeeze.15
= control target key start
LH: loop header
LB: loop body
LE: loop exit
PB: predicated region body
PF: predicated region fallthrough
CT: control target
= control target key end

     0   :  { %vm7_vm0 = vcmask 130048   ;;  %s39_s0 = inlined_call_operand.vmem [shape: f32[32], index: 0, kind: input, shape index: {}]   ;;  %s40_s1 = inlined_call_operand.vmem [shape: f32[2,16], index: 1, kind: output, shape index: {}]  }
   0x1   :  { %v4_v0 = vld [vmem:[%s39_s0] sm:$0x1]  ;;  %s22_s0 = smov 112  }
   0x2   :  { %5 = vst [vmem:[#allocation1] sm:$0x1] %v4_v0 }
   0x9   :  { %v9_v1 = vld [vmem:[#allocation1] sm:$0x1]  }
   0xa   :  { %v6_v2 = vld [vmem:[#allocation1] sm:$0x1]   ;;  %10 = vrot.lane.b32.xlu0 %v9_v1, %s22_s0 }
   0xb   :  { %8 = vst.msk [vmem:[#allocation0] sm:$0x1] %vm7_vm0, %v6_v2  }
  0x7c   :  { %v11_v3 = vpop.permute.xlu0 %10  }
  0x7d   :  { %14 = vst.msk [vmem:[#allocation0 + $0x1] sm:$0x1] %vm7_vm0, %v11_v3  }
  0x84   :  { %v18_v4 = vld [vmem:[#allocation0] sm:$0x3] }
  0x85   :  { %20 = vst [vmem:[%s40_s1] sm:$0x3] %v18_v4 }

// kernel: nbfnet_forward.1
= control target key start
LH: loop header
LB: loop body
LE: loop exit
PB: predicated region body
PF: predicated region fallthrough
CT: control target
= control target key end

     0   :  { %vm119_vm0 = vcmask 261120   ;;  %s1741_s19 = smov 32   ;;  %vm418_vm1 = vcmask 523264   ;;  %s1743_s14 = smov 64   ;;  %s2280_s1 = inlined_call_operand.vmem [shape: f32[2,32,32], index: 1, kind: input, shape index: {}]   ;;  %s2281_s0 = inlined_call_operand.vmem [shape: bf16[192,32], index: 0, kind: input, shape index: {}]   ;;  %s2282_s2 = inlined_call_operand.vmem [shape: f32[2,192,32], index: 2, kind: input, shape index: {}]   ;;  %s2283_s4 = inlined_call_operand.vmem [shape: bf16[64,768], index: 4, kind: input, shape index: {}]   ;;  %s2284_s5 = inlined_call_operand.vmem [shape: f32[1,768], index: 5, kind: input, shape index: {}]   ;;  %s2285_s3 = inlined_call_operand.vmem [shape: bf16[96,32], index: 3, kind: input, shape index: {}]   ;;  %s2286_s6 = inlined_call_operand.vmem [shape: f32[32,128], index: 6, kind: output, shape index: {}]  }
   0x1   :  { %v1782_v0 = vld [vmem:[%s2280_s1] sm:$0xff]  ;;  %v1787_v1 = vld [vmem:[%s2280_s1 + $0x8] sm:$0xff]  ;;  %v1792_v2 = vld [vmem:[%s2280_s1 + $0x10] sm:$0xff] }
   0x2   :  { %v57_v3 = vpack.c.bf16 %v1787_v1, %v1782_v0  ;;  %v1799_v4 = vld [vmem:[%s2280_s1 + $0x18] sm:$0xff]  ;;  %v1806_v6 = vld [vmem:[%s2281_s0] sm:$0xff]   ;;  %v1813_v7 = vld [vmem:[%s2281_s0 + $0x8] sm:$0xff]  }
   0x3   :  { %v58_v5 = vpack.c.bf16 %v1799_v4, %v1792_v2  ;;  %1556 = vmatprep.mubr.msk.bf16.mxu0 %vm119_vm0, %v1806_v6  ;;  %v1818_v8 = vld [vmem:[%s2281_s0 + $0x10] sm:$0xff]   ;;  %v1827_v9 = vld [vmem:[%s2281_s0 + $0x18] sm:$0xff]   ;;  %v1832_v10 = vld [vmem:[%s2281_s0 + $0x20] sm:$0xff]  }
   0x4   :  { %1552 = vmatprep.subr.bf16.mxu0 %v57_v3  ;;  %v1841_v11 = vld [vmem:[%s2281_s0 + $0x28] sm:$0xff]   ;;  %v1846_v12 = vld [vmem:[%s2281_s0 + $0x30] sm:$0xff]   ;;  %v1855_v13 = vld [vmem:[%s2281_s0 + $0x38] sm:$0xff]  }
   0x5   :  { %1553 = vmatpush3.bf16.msra.mxu0 %v57_v3  ;;  %v1860_v14 = vld [vmem:[%s2281_s0 + $0x40] sm:$0xff]   ;;  %v1869_v15 = vld [vmem:[%s2281_s0 + $0x48] sm:$0xff]   ;;  %v1874_v16 = vld [vmem:[%s2281_s0 + $0x50] sm:$0xff]  }
   0x6   :  { %1554 = vmatprep.subr.bf16.mxu0 %v58_v5  ;;  %v1883_v17 = vld [vmem:[%s2281_s0 + $0x58] sm:$0xff]   ;;  %v287_v18 = vld [vmem:[%s2282_s2 + $0x10] sm:$0xff]  ;;  %v285_v19 = vld [vmem:[%s2282_s2] sm:$0xff] }
   0x7   :  { %v288_v21 = vld [vmem:[%s2282_s2 + $0x18] sm:$0xff]  ;;  %v286_v24 = vld [vmem:[%s2282_s2 + $0x8] sm:$0xff]  ;;  %v289_v32 = vld [vmem:[%s2282_s2 + $0x20] sm:$0xff] }
   0x8   :  { %v291_v34 = vld [vmem:[%s2282_s2 + $0x30] sm:$0xff]  ;;  %v290_v36 = vld [vmem:[%s2282_s2 + $0x28] sm:$0xff]  ;;  %v292_v39 = vld [vmem:[%s2282_s2 + $0x38] sm:$0xff] }
   0x9   :  { %1555 = vmatpush3.bf16.msra.mxu0 %v58_v5  ;;  %v293_v47 = vld [vmem:[%s2282_s2 + $0x40] sm:$0xff]  ;;  %v295_v50 = vld [vmem:[%s2282_s2 + $0x50] sm:$0xff]  ;;  %v294_v52 = vld [vmem:[%s2282_s2 + $0x48] sm:$0xff] }
   0xa   :  { %v296_v55 = vld [vmem:[%s2282_s2 + $0x58] sm:$0xff]  ;;  %v299_v63 = vld [vmem:[%s2282_s2 + $0x70] sm:$0xff]  ;;  %v297_v3 = vld [vmem:[%s2282_s2 + $0x60] sm:$0xff] }
   0xb   :  { %v300_v5 = vld [vmem:[%s2282_s2 + $0x78] sm:$0xff] }
   0xc   :  { %1557 = vmatmul.mubr.msk.bf16.vlgmr.msra.gmra.mrb[0].mxu0 %vm119_vm0, %v1813_v7 }
   0xd   :  { %1560 = vmatprep.mubr.msk.bf16.mxu0 %vm119_vm0, %v1818_v8 }
  0x14   :  { %1561 = vmatmul.mubr.msk.bf16.gmra.mrb[4].mxu0 %vm119_vm0, %v1827_v9 }
  0x15   :  { %1564 = vmatprep.mubr.msk.bf16.mxu0 %vm119_vm0, %v1832_v10 }
  0x1c   :  { %1565 = vmatmul.mubr.msk.bf16.gmra.mrb[8].mxu0 %vm119_vm0, %v1841_v11 }
  0x1d   :  { %1568 = vmatprep.mubr.msk.bf16.mxu0 %vm119_vm0, %v1846_v12 }
  0x24   :  { %1569 = vmatmul.mubr.msk.bf16.gmra.mrb[12].mxu0 %vm119_vm0, %v1855_v13 }
  0x25   :  { %1572 = vmatprep.mubr.msk.bf16.mxu0 %vm119_vm0, %v1860_v14 }
  0x2c   :  { %1573 = vmatmul.mubr.msk.bf16.gmra.mrb[16].mxu0 %vm119_vm0, %v1869_v15 }
  0x2d   :  { %1576 = vmatprep.mubr.msk.bf16.mxu0 %vm119_vm0, %v1874_v16 }
  0x34   :  { %1577 = vmatmul.mubr.msk.bf16.gmra.mrb[20].mxu0 %vm119_vm0, %v1883_v17 }
  0xdf   :  { %v1558_v20 = vpop.f32.mrb[0].mxu0 }
  0xe0   :  { %v311_v22 = vmul.f32 %v1558_v20, %v287_v18  ;;  %v190_v23 = vpop.f32.mrb[1].mxu0  ;;  %v298_v18 = vld [vmem:[%s2282_s2 + $0x68] sm:$0xff] }
  0xe1   :  { %v309_v25 = vmul.f32 %v285_v19, %v190_v23  ;;  %v1559_v26 = vpop.f32.mrb[2].mxu0  ;;  %v1707_v19 = vld [vmem:[%s2283_s4] ss:$24 sps:$4 sm:$0xff]  }
  0xe2   :  { %v312_v27 = vmul.f32 %v1559_v26, %v288_v21  ;;  %v193_v28 = vpop.f32.mrb[3].mxu0  ;;  %1580 = vmatprep.subr.bf16.mxu1 %v1707_v19 }
  0xe3   :  { %v333_v29 = vadd.f32 %v311_v22, %v309_v25  ;;  %v310_v30 = vmul.f32 %v286_v24, %v193_v28  ;;  %v1708_v24 = vld [vmem:[%s2283_s4 + $0x30] ss:$24 sps:$4 sm:$0xff]   ;;  %1581 = vmatpush3.bf16.msra.mxu1 %v1707_v19 }
  0xe4   :  { %1582 = vmatprep.subr.bf16.mxu1 %v1708_v24 }
  0xe5   :  { %v334_v31 = vadd.f32 %v312_v27, %v310_v30 }
  0xe7   :  { %v1562_v33 = vpop.f32.mrb[4].mxu0  ;;  %1583 = vmatpush3.bf16.msra.mxu1 %v1708_v24 }
  0xe8   :  { %v206_v35 = vpop.f32.mrb[5].mxu0  ;;  %v315_v41 = vmul.f32 %v1562_v33, %v291_v34 }
  0xe9   :  { %v313_v37 = vmul.f32 %v289_v32, %v206_v35  ;;  %v1563_v38 = vpop.f32.mrb[6].mxu0  ;;  %v301_v35 = vld [vmem:[%s2282_s2 + $0x80] sm:$0xff] }
  0xea   :  { %v209_v40 = vpop.f32.mrb[7].mxu0  ;;  %v316_v44 = vmul.f32 %v1563_v38, %v292_v39  ;;  %v303_v38 = vld [vmem:[%s2282_s2 + $0x90] sm:$0xff] }
  0xeb   :  { %v335_v42 = vadd.f32 %v333_v29, %v313_v37  ;;  %v314_v43 = vmul.f32 %v290_v36, %v209_v40  ;;  %v1709_v29 = vld [vmem:[%s2283_s4 + $0x60] ss:$24 sps:$4 sm:$0xff]   ;;  %v302_v40 = vld [vmem:[%s2282_s2 + $0x88] sm:$0xff] }
  0xec   :  { %1584 = vmatprep.subr.bf16.mxu1 %v1709_v29 }
  0xed   :  { %v336_v45 = vadd.f32 %v334_v31, %v314_v43  ;;  %v337_v46 = vadd.f32 %v335_v42, %v315_v41  ;;  %1585 = vmatpush3.bf16.msra.mxu1 %v1709_v29  ;;  %v304_v43 = vld [vmem:[%s2282_s2 + $0x98] sm:$0xff] }
  0xef   :  { %v1566_v48 = vpop.f32.mrb[8].mxu0  ;;  %v338_v49 = vadd.f32 %v336_v45, %v316_v44 }
  0xf0   :  { %v222_v51 = vpop.f32.mrb[9].mxu0  ;;  %v319_v57 = vmul.f32 %v1566_v48, %v295_v50 }
  0xf1   :  { %v317_v53 = vmul.f32 %v293_v47, %v222_v51  ;;  %v1567_v54 = vpop.f32.mrb[10].mxu0  ;;  %v305_v51 = vld [vmem:[%s2282_s2 + $0xa0] sm:$0xff] }
  0xf2   :  { %v225_v56 = vpop.f32.mrb[11].mxu0  ;;  %v320_v61 = vmul.f32 %v1567_v54, %v296_v55  ;;  %v1710_v54 = vld [vmem:[%s2283_s4 + $0x90] ss:$24 sps:$4 sm:$0xff]  }
  0xf3   :  { %v339_v58 = vadd.f32 %v337_v46, %v317_v53  ;;  %v318_v59 = vmul.f32 %v294_v52, %v225_v56  ;;  %v307_v55 = vld [vmem:[%s2282_s2 + $0xb0] sm:$0xff]  ;;  %1586 = vmatprep.subr.bf16.mxu1 %v1710_v54 }
  0xf4   :  { %1587 = vmatpush3.bf16.msra.mxu1 %v1710_v54 }
  0xf5   :  { %v341_v60 = vadd.f32 %v339_v58, %v319_v57  ;;  %v340_v62 = vadd.f32 %v338_v49, %v318_v59  ;;  %v306_v57 = vld [vmem:[%s2282_s2 + $0xa8] sm:$0xff] }
  0xf7   :  { %v342_v20 = vadd.f32 %v340_v62, %v320_v61  ;;  %v1570_v21 = vpop.f32.mrb[12].mxu0  ;;  %v353_v27 = vadd.f32 %v341_v60, %v1782_v0  ;;  %v308_v60 = vld [vmem:[%s2282_s2 + $0xb8] sm:$0xff] }
  0xf8   :  { %v323_v22 = vmul.f32 %v1570_v21, %v299_v63  ;;  %v238_v23 = vpop.f32.mrb[13].mxu0 }
  0xf9   :  { %v321_v25 = vmul.f32 %v297_v3, %v238_v23  ;;  %v1571_v26 = vpop.f32.mrb[14].mxu0  ;;  %v354_v28 = vadd.f32 %v342_v20, %v1787_v1 }
  0xfa   :  { %v324_v30 = vmul.f32 %v1571_v26, %v300_v5  ;;  %v241_v31 = vpop.f32.mrb[15].mxu0 }
  0xfb   :  { %v343_v32 = vadd.f32 %v323_v22, %v321_v25  ;;  %v322_v33 = vmul.f32 %v298_v18, %v241_v31  ;;  %v1675_v34 = vpack.i.bf16 %v354_v28, %v353_v27 }
  0xfd   :  { %v344_v36 = vadd.f32 %v324_v30, %v322_v33  ;;  %1676 = vrot.lane.b32.xlu0 %v1675_v34, %s1741_s19 }
  0xff   :  { %v1574_v37 = vpop.f32.mrb[16].mxu0 }
 0x100   :  { %v254_v39 = vpop.f32.mrb[17].mxu0  ;;  %v327_v45 = vmul.f32 %v1574_v37, %v303_v38 }
 0x101   :  { %v325_v41 = vmul.f32 %v301_v35, %v254_v39  ;;  %v1575_v42 = vpop.f32.mrb[18].mxu0 }
 0x102   :  { %v257_v44 = vpop.f32.mrb[19].mxu0  ;;  %v328_v48 = vmul.f32 %v1575_v42, %v304_v43 }
 0x103   :  { %v345_v46 = vadd.f32 %v343_v32, %v325_v41  ;;  %v326_v47 = vmul.f32 %v302_v40, %v257_v44 }
 0x105   :  { %v346_v49 = vadd.f32 %v344_v36, %v326_v47  ;;  %v347_v50 = vadd.f32 %v345_v46, %v327_v45  ;;  %v1402_v36 = vld [vmem:[%s2284_s5] ss:$0 sm:$0xff] }
 0x107   :  { %v1578_v52 = vpop.f32.mrb[20].mxu0  ;;  %v348_v53 = vadd.f32 %v346_v49, %v328_v48 }
 0x108   :  { %v270_v56 = vpop.f32.mrb[21].mxu0  ;;  %v331_v62 = vmul.f32 %v1578_v52, %v307_v55  ;;  %v1425_v55 = vld [vmem:[%s2282_s2 + $0xe0] sm:$0xff] }
 0x109   :  { %v329_v58 = vmul.f32 %v305_v51, %v270_v56  ;;  %v1579_v59 = vpop.f32.mrb[22].mxu0 }
 0x10a   :  { %v273_v61 = vpop.f32.mrb[23].mxu0  ;;  %v332_v18 = vmul.f32 %v1579_v59, %v308_v60  ;;  %v1426_v59 = vld [vmem:[%s2282_s2 + $0xe8] sm:$0xff] }
 0x10b   :  { %v349_v63 = vadd.f32 %v347_v50, %v329_v58  ;;  %v330_v3 = vmul.f32 %v306_v57, %v273_v61  ;;  %v1427_v57 = vld [vmem:[%s2282_s2 + $0xf0] sm:$0xff] }
 0x10d   :  { %v351_v5 = vadd.f32 %v349_v63, %v331_v62  ;;  %v350_v19 = vadd.f32 %v348_v53, %v330_v3  ;;  %v1428_v62 = vld [vmem:[%s2282_s2 + $0xf8] sm:$0xff] }
 0x10f   :  { %v352_v20 = vadd.f32 %v350_v19, %v332_v18  ;;  %v355_v21 = vadd.f32 %v351_v5, %v1792_v2 }
 0x111   :  { %v356_v22 = vadd.f32 %v352_v20, %v1799_v4 }
 0x113   :  { %v1680_v23 = vpack.i.bf16 %v356_v22, %v355_v21  ;;  %v1429_v22 = vld [vmem:[%s2282_s2 + $0x100] sm:$0xff] }
 0x115   :  { %1681 = vrot.lane.b32.xlu0 %v1680_v23, %s1741_s19 }
 0x16f   :  { %v1677_v24 = vpop.permute.xlu0 %1676 }
 0x170   :  { %v1679_v25 = vunpack.i.h.bf16 %v1677_v24  ;;  %v1678_v26 = vunpack.i.l.bf16 %v1677_v24 }
 0x172   :  { %v373_v27 = vsel %vm119_vm0, %v1782_v0, %v1678_v26  ;;  %v374_v28 = vsel %vm119_vm0, %v1787_v1, %v1679_v25  ;;  %v1431_v25 = vld [vmem:[%s2282_s2 + $0x110] sm:$0xff] }
 0x173   :  { %v377_v29 = vpack.c.bf16 %v374_v28, %v373_v27  ;;  %v1430_v27 = vld [vmem:[%s2282_s2 + $0x108] sm:$0xff] }
 0x175   :  { %1588 = vmatprep.mubr.msk.bf16.mxu1 %vm418_vm1, %v377_v29 }
 0x187   :  { %v1682_v30 = vpop.permute.xlu0 %1681 }
 0x188   :  { %v1684_v31 = vunpack.i.h.bf16 %v1682_v30  ;;  %v1683_v32 = vunpack.i.l.bf16 %v1682_v30  ;;  %v1432_v30 = vld [vmem:[%s2282_s2 + $0x118] sm:$0xff] }
 0x18a   :  { %v376_v33 = vsel %vm119_vm0, %v1799_v4, %v1684_v31  ;;  %v375_v34 = vsel %vm119_vm0, %v1792_v2, %v1683_v32 }
 0x18b   :  { %v378_v35 = vpack.c.bf16 %v376_v33, %v375_v34 }
 0x18d   :  { %1589 = vmatmul.mubr.msk.bf16.vlgmr.msra.gmra.mrb[0].mxu1 %vm418_vm1, %v378_v35  ;;  %v1713_v35 = vld [vmem:[%s2283_s4 + $0x64] ss:$24 sps:$4 sm:$0xff]  }
 0x18e   :  { %1596 = vmatprep.mubr.msk.bf16.mxu1 %vm119_vm0, %v1806_v6 }
 0x260   :  { %v1590_v37 = vpop.f32.mrb[0].mxu1 }
 0x261   :  { %v459_v38 = vpop.f32.mrb[1].mxu1  ;;  %v1996_v43 = vadd.f32 %v1590_v37, %v1402_v36 }
 0x262   :  { %v1992_v39 = vadd.f32 %v1402_v36, %v459_v38  ;;  %v1591_v40 = vpop.f32.mrb[2].mxu1 }
 0x263   :  { %v1994_v41 = vadd.f32 %v1591_v40, %v1402_v36  ;;  %v462_v42 = vpop.f32.mrb[3].mxu1  ;;  %v476_v47 = vmax.f32 %v1996_v43, 0.0  ;;  %v1435_v40 = vld [vmem:[%s2282_s2 + $0x130] sm:$0xff]  ;;  %v1726_v43 = vld [vmem:[%s2283_s4 + $0x44] ss:$24 sps:$4 sm:$0xff]  }
 0x264   :  { %v1998_v44 = vadd.f32 %v1402_v36, %v462_v42  ;;  %v474_v45 = vmax.f32 %v1992_v39, 0.0  ;;  %v1714_v42 = vld [vmem:[%s2283_s4 + $0x94] ss:$24 sps:$4 sm:$0xff]   ;;  %v1715_v39 = vld [vmem:[%s2285_s3] sm:$0xff]  }
 0x265   :  { %v477_v6 = vmax.f32 %v1994_v41, 0.0  ;;  %v1723_v41 = vld [vmem:[%s2283_s4 + $0x14] ss:$24 sps:$4 sm:$0xff]  }
 0x266   :  { %v475_v46 = vmax.f32 %v1998_v44, 0.0 }
 0x267   :  { %v479_v49 = vpack.c.bf16 %v477_v6, %v476_v47 }
 0x268   :  { %v478_v48 = vpack.c.bf16 %v475_v46, %v474_v45 }
 0x26a   :  { %1592 = vmatprep.subr.bf16.mxu1 %v478_v48 }
 0x26b   :  { %1593 = vmatpush3.bf16.msra.mxu1 %v478_v48  ;;  %v1433_v48 = vld [vmem:[%s2282_s2 + $0x120] sm:$0xff] }
 0x26c   :  { %1594 = vmatprep.subr.bf16.mxu1 %v479_v49 }
 0x26f   :  { %1595 = vmatpush3.bf16.msra.mxu1 %v479_v49 }
 0x270   :  { %1049 = vmatprep.subr.bf16.mxu1 %v1723_v41 }
 0x272   :  { %1597 = vmatmul.mubr.msk.bf16.vlgmr.msra.gmra.mrb[4].mxu1 %vm119_vm0, %v1813_v7  ;;  %v1711_v7 = vld [vmem:[%s2283_s4 + $0x4] ss:$24 sps:$4 sm:$0xff]  }
 0x273   :  { %1600 = vmatprep.mubr.msk.bf16.mxu1 %vm119_vm0, %v1818_v8  ;;  %v1712_v8 = vld [vmem:[%s2283_s4 + $0x34] ss:$24 sps:$4 sm:$0xff]   ;;  %1620 = vmatprep.subr.bf16.mxu0 %v1711_v7 }
 0x274   :  { %1621 = vmatpush3.bf16.msra.mxu0 %v1711_v7 }
 0x275   :  { %1622 = vmatprep.subr.bf16.mxu0 %v1712_v8 }
 0x278   :  { %1623 = vmatpush3.bf16.msra.mxu0 %v1712_v8  ;;  %v1436_v8 = vld [vmem:[%s2282_s2 + $0x138] sm:$0xff] }
 0x279   :  { %1624 = vmatprep.subr.bf16.mxu0 %v1713_v35 }
 0x27a   :  { %1601 = vmatmul.mubr.msk.bf16.gmra.mrb[8].mxu1 %vm119_vm0, %v1827_v9  ;;  %v1423_v9 = vld [vmem:[%s2282_s2 + $0xd0] sm:$0xff] }
 0x27b   :  { %1604 = vmatprep.mubr.msk.bf16.mxu1 %vm119_vm0, %v1832_v10  ;;  %v1421_v10 = vld [vmem:[%s2282_s2 + $0xc0] sm:$0xff] }
 0x27c   :  { %1625 = vmatpush3.bf16.msra.mxu0 %v1713_v35  ;;  %v1374_v35 = vld [vmem:[%s2280_s1 + $0x20] sm:$0xff] }
 0x27d   :  { %1626 = vmatprep.subr.bf16.mxu0 %v1714_v42  ;;  %806 = vrot.lane.b32.xlu0 %v1374_v35, %s1741_s19 }
 0x280   :  { %1627 = vmatpush3.bf16.msra.mxu0 %v1714_v42 }
 0x282   :  { %1605 = vmatmul.mubr.msk.bf16.gmra.mrb[12].mxu1 %vm119_vm0, %v1841_v11 }
 0x283   :  { %1608 = vmatprep.mubr.msk.bf16.mxu1 %vm119_vm0, %v1846_v12  ;;  %v1424_v12 = vld [vmem:[%s2282_s2 + $0xd8] sm:$0xff] }
 0x28a   :  { %1609 = vmatmul.mubr.msk.bf16.gmra.mrb[16].mxu1 %vm119_vm0, %v1855_v13 }
 0x28b   :  { %1612 = vmatprep.mubr.msk.bf16.mxu1 %vm119_vm0, %v1860_v14 }
 0x292   :  { %1613 = vmatmul.mubr.msk.bf16.gmra.mrb[20].mxu1 %vm119_vm0, %v1869_v15  ;;  %v1422_v15 = vld [vmem:[%s2282_s2 + $0xc8] sm:$0xff] }
 0x293   :  { %1616 = vmatprep.mubr.msk.bf16.mxu1 %vm119_vm0, %v1874_v16 }
 0x29a   :  { %1617 = vmatmul.mubr.msk.bf16.gmra.mrb[24].mxu1 %vm119_vm0, %v1883_v17 }
 0x345   :  { %v1598_v11 = vpop.f32.mrb[4].mxu1 }
 0x346   :  { %v636_v13 = vmul.f32 %v1598_v11, %v1423_v9  ;;  %v514_v14 = vpop.f32.mrb[5].mxu1  ;;  %v1434_v11 = vld [vmem:[%s2282_s2 + $0x128] sm:$0xff] }
 0x347   :  { %v634_v16 = vmul.f32 %v1421_v10, %v514_v14  ;;  %v1599_v17 = vpop.f32.mrb[6].mxu1 }
 0x348   :  { %v637_v50 = vmul.f32 %v1599_v17, %v1424_v12  ;;  %v517_v51 = vpop.f32.mrb[7].mxu1 }
 0x349   :  { %v658_v52 = vadd.f32 %v636_v13, %v634_v16  ;;  %v635_v53 = vmul.f32 %v1422_v15, %v517_v51 }
 0x34b   :  { %v659_v54 = vadd.f32 %v637_v50, %v635_v53 }
 0x34d   :  { %v1602_v56 = vpop.f32.mrb[8].mxu1 }
 0x34e   :  { %v530_v58 = vpop.f32.mrb[9].mxu1  ;;  %v640_v3 = vmul.f32 %v1602_v56, %v1427_v57 }
 0x34f   :  { %v638_v60 = vmul.f32 %v1425_v55, %v530_v58  ;;  %v1603_v61 = vpop.f32.mrb[10].mxu1 }
 0x350   :  { %v533_v63 = vpop.f32.mrb[11].mxu1  ;;  %v641_v19 = vmul.f32 %v1603_v61, %v1428_v62 }
 0x351   :  { %v660_v5 = vadd.f32 %v658_v52, %v638_v60  ;;  %v639_v18 = vmul.f32 %v1426_v59, %v533_v63  ;;  %v1440_v59 = vld [vmem:[%s2282_s2 + $0x158] sm:$0xff] }
 0x353   :  { %v661_v20 = vadd.f32 %v659_v54, %v639_v18  ;;  %v662_v21 = vadd.f32 %v660_v5, %v640_v3  ;;  %v1437_v54 = vld [vmem:[%s2282_s2 + $0x140] sm:$0xff] }
 0x355   :  { %v1606_v23 = vpop.f32.mrb[12].mxu1  ;;  %v663_v24 = vadd.f32 %v661_v20, %v641_v19  ;;  %v1441_v19 = vld [vmem:[%s2282_s2 + $0x160] sm:$0xff] }
 0x356   :  { %v546_v26 = vpop.f32.mrb[13].mxu1  ;;  %v644_v32 = vmul.f32 %v1606_v23, %v1431_v25 }
 0x357   :  { %v642_v28 = vmul.f32 %v1429_v22, %v546_v26  ;;  %v1607_v29 = vpop.f32.mrb[14].mxu1  ;;  %v1443_v22 = vld [vmem:[%s2282_s2 + $0x170] sm:$0xff] }
 0x358   :  { %v549_v31 = vpop.f32.mrb[15].mxu1  ;;  %v645_v37 = vmul.f32 %v1607_v29, %v1432_v30 }
 0x359   :  { %v664_v33 = vadd.f32 %v662_v21, %v642_v28  ;;  %v643_v34 = vmul.f32 %v1430_v27, %v549_v31  ;;  %v1444_v27 = vld [vmem:[%s2282_s2 + $0x178] sm:$0xff] }
 0x35b   :  { %v666_v36 = vadd.f32 %v664_v33, %v644_v32  ;;  %v665_v38 = vadd.f32 %v663_v24, %v643_v34  ;;  %v1442_v24 = vld [vmem:[%s2282_s2 + $0x168] sm:$0xff] }
 0x35d   :  { %v667_v49 = vadd.f32 %v665_v38, %v645_v37  ;;  %v1610_v7 = vpop.f32.mrb[16].mxu1  ;;  %v678_v14 = vadd.f32 %v666_v36, %v1782_v0  ;;  %v1439_v0 = vld [vmem:[%s2282_s2 + $0x150] sm:$0xff] }
 0x35e   :  { %v648_v9 = vmul.f32 %v1610_v7, %v1435_v40  ;;  %v562_v10 = vpop.f32.mrb[17].mxu1  ;;  %v1376_v37 = vld [vmem:[%s2280_s1 + $0x30] sm:$0xff] }
 0x35f   :  { %v646_v12 = vmul.f32 %v1433_v48, %v562_v10  ;;  %v1611_v13 = vpop.f32.mrb[18].mxu1  ;;  %v679_v15 = vadd.f32 %v667_v49, %v1787_v1  ;;  %v1438_v1 = vld [vmem:[%s2282_s2 + $0x148] sm:$0xff]  ;;  %810 = vrot.lane.b32.xlu0 %v1376_v37, %s1741_s19  ;;  %v1377_v49 = vld [vmem:[%s2280_s1 + $0x38] sm:$0xff] }
 0x360   :  { %v649_v16 = vmul.f32 %v1611_v13, %v1436_v8  ;;  %v565_v17 = vpop.f32.mrb[19].mxu1  ;;  %v1375_v48 = vld [vmem:[%s2280_s1 + $0x28] sm:$0xff] }
 0x361   :  { %v668_v50 = vadd.f32 %v648_v9, %v646_v12  ;;  %v647_v51 = vmul.f32 %v1434_v11, %v565_v17  ;;  %v1685_v52 = vpack.i.bf16 %v679_v15, %v678_v14  ;;  %v1730_v17 = vld [vmem:[%s2283_s4 + $0xa0] ss:$24 sps:$4 sm:$0xff]  }
 0x363   :  { %v669_v53 = vadd.f32 %v649_v16, %v647_v51  ;;  %1686 = vrot.lane.b32.xlu1 %v1685_v52, %s1741_s19  ;;  %v1732_v16 = vld [vmem:[%s2283_s4 + $0xa4] ss:$24 sps:$4 sm:$0xff]  }
 0x365   :  { %v1614_v55 = vpop.f32.mrb[20].mxu1 }
 0x366   :  { %v578_v56 = vpop.f32.mrb[21].mxu1  ;;  %v652_v61 = vmul.f32 %v1614_v55, %v1439_v0 }
 0x367   :  { %v650_v57 = vmul.f32 %v1437_v54, %v578_v56  ;;  %v1615_v58 = vpop.f32.mrb[22].mxu1 }
 0x368   :  { %v581_v60 = vpop.f32.mrb[23].mxu1  ;;  %v653_v3 = vmul.f32 %v1615_v58, %v1440_v59 }
 0x369   :  { %v670_v62 = vadd.f32 %v668_v50, %v650_v57  ;;  %v651_v63 = vmul.f32 %v1438_v1, %v581_v60  ;;  %v1445_v50 = vld [vmem:[%s2284_s5 + $0x1] ss:$0 sm:$0xff] }
 0x36b   :  { %v671_v5 = vadd.f32 %v669_v53, %v651_v63  ;;  %v672_v18 = vadd.f32 %v670_v62, %v652_v61  ;;  %v807_v53 = vpop.permute.xlu0 %806 }
 0x36d   :  { %v1618_v20 = vpop.f32.mrb[24].mxu1  ;;  %v673_v21 = vadd.f32 %v671_v5, %v653_v3 }
 0x36e   :  { %v594_v23 = vpop.f32.mrb[25].mxu1  ;;  %v656_v29 = vmul.f32 %v1618_v20, %v1443_v22 }
 0x36f   :  { %v654_v25 = vmul.f32 %v1441_v19, %v594_v23  ;;  %v1619_v26 = vpop.f32.mrb[26].mxu1  ;;  %v1716_v23 = vld [vmem:[%s2285_s3 + $0x8] sm:$0xff]  }
 0x370   :  { %v597_v28 = vpop.f32.mrb[27].mxu1  ;;  %v657_v33 = vmul.f32 %v1619_v26, %v1444_v27  ;;  %v1719_v26 = vld [vmem:[%s2285_s3 + $0x20] sm:$0xff]   ;;  %v1720_v27 = vld [vmem:[%s2285_s3 + $0x28] sm:$0xff]  }
 0x371   :  { %v674_v30 = vadd.f32 %v672_v18, %v654_v25  ;;  %v655_v31 = vmul.f32 %v1442_v24, %v597_v28  ;;  %v1717_v24 = vld [vmem:[%s2285_s3 + $0x10] sm:$0xff]   ;;  %v1718_v25 = vld [vmem:[%s2285_s3 + $0x18] sm:$0xff]   ;;  %v1742_v28 = vmov 0  }
 0x372   :  { %1081 = vmatprep.mubr.bf16.mxu1 %v1742_v28 }
 0x373   :  { %v676_v32 = vadd.f32 %v674_v30, %v656_v29  ;;  %v675_v34 = vadd.f32 %v673_v21, %v655_v31 }
 0x375   :  { %v677_v36 = vadd.f32 %v675_v34, %v657_v33  ;;  %v680_v38 = vadd.f32 %v676_v32, %v1792_v2 }
 0x377   :  { %v681_v40 = vadd.f32 %v677_v36, %v1799_v4 }
 0x379   :  { %v1690_v42 = vpack.i.bf16 %v681_v40, %v680_v38 }
 0x37b   :  { %1691 = vrot.lane.b32.xlu1 %v1690_v42, %s1741_s19 }
 0x37f   :  { %808 = vrot.lane.b32.xlu1 %v1375_v48, %s1741_s19 }
 0x383   :  { %812 = vrot.lane.b32.xlu1 %v1377_v49, %s1741_s19 }
 0x3d1   :  { %v811_v3 = vpop.permute.xlu0 %810 }
 0x3d5   :  { %v1687_v2 = vpop.permute.xlu1 %1686 }
 0x3d6   :  { %v1689_v7 = vunpack.i.h.bf16 %v1687_v2  ;;  %v1688_v4 = vunpack.i.l.bf16 %v1687_v2 }
 0x3d8   :  { %v699_v8 = vsel %vm119_vm0, %v475_v46, %v1689_v7  ;;  %v698_v9 = vsel %vm119_vm0, %v474_v45, %v1688_v4  ;;  %v1721_v45 = vld [vmem:[%s2283_s4 + $0x10] ss:$24 sps:$4 sm:$0xff]   ;;  %v1729_v46 = vld [vmem:[%s2283_s4 + $0x74] ss:$24 sps:$4 sm:$0xff]  }
 0x3d9   :  { %v702_v10 = vpack.c.bf16 %v699_v8, %v698_v9  ;;  %1050 = vmatpush1.bf16.msra.mxu1 %v1721_v45  ;;  %v1733_v9 = vld [vmem:[%s2283_s4 + $0x8] ss:$24 sps:$4 sm:$0xff]  }
 0x3da   :  { %1051 = vmatprep.subr.bf16.mxu1 %v1726_v43 }
 0x3db   :  { %1628 = vmatprep.mubr.msk.bf16.mxu0 %vm418_vm1, %v702_v10  ;;  %v1734_v10 = vld [vmem:[%s2283_s4 + $0x38] ss:$24 sps:$4 sm:$0xff]  }
 0x3ed   :  { %v1692_v11 = vpop.permute.xlu1 %1691 }
 0x3ee   :  { %v1694_v12 = vunpack.i.h.bf16 %v1692_v11  ;;  %v1693_v13 = vunpack.i.l.bf16 %v1692_v11  ;;  %v981_v11 = vlaneseq }
 0x3f0   :  { %v701_v14 = vsel %vm119_vm0, %v477_v6, %v1694_v12  ;;  %v700_v44 = vsel %vm119_vm0, %v476_v47, %v1693_v13  ;;  %v1724_v6 = vld [vmem:[%s2283_s4 + $0x40] ss:$24 sps:$4 sm:$0xff]   ;;  %v1727_v47 = vld [vmem:[%s2283_s4 + $0x70] ss:$24 sps:$4 sm:$0xff]   ;;  %v982_v12 = vshrl.u32 %v981_v11, 7 }
 0x3f1   :  { %v703_v15 = vpack.c.bf16 %v701_v14, %v700_v44  ;;  %1052 = vmatpush1.bf16.msra.mxu1 %v1724_v6  ;;  %v809_v51 = vpop.permute.xlu1 %808  ;;  %v979_v14 = vld [vmem:[%s2284_s5 + $0x4] sm:$0x3] }
 0x3f2   :  { %1053 = vmatprep.subr.bf16.mxu1 %v1729_v46  ;;  %v983_v13 = vsub.s32 0, %v982_v12 }
 0x3f3   :  { %1629 = vmatmul.mubr.msk.bf16.vlgmr.msra.gmra.mrb[24].mxu0 %vm418_vm1, %v703_v15 }
 0x3f4   :  { %1636 = vmatprep.mubr.msk.bf16.mxu0 %vm119_vm0, %v1715_v39  ;;  %v984_v44 = vrot.slane %v979_v14, %v983_v13 }
 0x3f5   :  { %1054 = vmatpush1.bf16.msra.mxu1 %v1727_v47  ;;  %v813_v61 = vpop.permute.xlu1 %812 }
 0x3f6   :  { %1055 = vmatprep.subr.bf16.mxu1 %v1732_v16 }
 0x3f9   :  { %1056 = vmatpush1.bf16.msra.mxu1 %v1730_v17 }
 0x4c6   :  { %v1630_v52 = vpop.f32.mrb[24].mxu0 }
 0x4c7   :  { %v783_v54 = vpop.f32.mrb[25].mxu0  ;;  %v792_v55 = vadd.f32 %v1630_v52, %v1445_v50  ;;  %v1735_v52 = vld [vmem:[%s2283_s4 + $0x68] ss:$24 sps:$4 sm:$0xff]  }
 0x4c8   :  { %v784_v0 = vadd.f32 %v1445_v50, %v783_v54  ;;  %v1631_v56 = vpop.f32.mrb[26].mxu0  ;;  %v1736_v54 = vld [vmem:[%s2283_s4 + $0x98] ss:$24 sps:$4 sm:$0xff]  }
 0x4c9   :  { %v795_v1 = vadd.f32 %v1631_v56, %v1445_v50  ;;  %v786_v57 = vpop.f32.mrb[27].mxu0  ;;  %v800_v62 = vmax.f32 %v792_v55, 0.0 }
 0x4ca   :  { %v798_v58 = vmax.f32 %v784_v0, 0.0  ;;  %v787_v59 = vadd.f32 %v1445_v50, %v786_v57 }
 0x4cb   :  { %v801_v60 = vmax.f32 %v795_v1, 0.0  ;;  %v2197_v21 = vsel %vm119_vm0, %v800_v62, %v811_v3 }
 0x4cc   :  { %v799_v63 = vmax.f32 %v787_v59, 0.0  ;;  %v2189_v18 = vsel %vm119_vm0, %v798_v58, %v807_v53 }
 0x4cd   :  { %v2186_v5 = vsel %vm119_vm0, %v801_v60, %v813_v61  ;;  %v1737_v60 = vld [vmem:[%s2283_s4 + $0xc] ss:$24 sps:$4 sm:$0xff]  }
 0x4ce   :  { %v2192_v19 = vsel %vm119_vm0, %v799_v63, %v809_v51  ;;  %v835_v22 = vpack.c.bf16 %v2186_v5, %v2197_v21 }
 0x4cf   :  { %v834_v20 = vpack.c.bf16 %v2192_v19, %v2189_v18 }
 0x4d1   :  { %1632 = vmatprep.subr.bf16.mxu0 %v834_v20 }
 0x4d2   :  { %1633 = vmatpush3.bf16.msra.mxu0 %v834_v20  ;;  %v987_v20 = vsub.s32 1, %v982_v12 }
 0x4d3   :  { %1634 = vmatprep.subr.bf16.mxu0 %v835_v22 }
 0x4d6   :  { %1635 = vmatpush3.bf16.msra.mxu0 %v835_v22 }
 0x4d7   :  { %1648 = vmatprep.subr.bf16.mxu0 %v1733_v9 }
 0x4d9   :  { %1637 = vmatmul.mubr.msk.bf16.vlgmr.msra.gmra.mrb[28].mxu0 %vm119_vm0, %v1716_v23 }
 0x4da   :  { %1640 = vmatprep.mubr.msk.bf16.mxu0 %vm119_vm0, %v1717_v24  ;;  %1649 = vmatpush3.bf16.msra.mxu0 %v1733_v9 }
 0x4db   :  { %1650 = vmatprep.subr.bf16.mxu0 %v1734_v10 }
 0x4de   :  { %1651 = vmatpush3.bf16.msra.mxu0 %v1734_v10 }
 0x4df   :  { %1652 = vmatprep.subr.bf16.mxu0 %v1735_v52 }
 0x4e1   :  { %1641 = vmatmul.mubr.msk.bf16.gmra.mrb[32].mxu0 %vm119_vm0, %v1718_v25 }
 0x4e2   :  { %1644 = vmatprep.mubr.msk.bf16.mxu0 %vm119_vm0, %v1719_v26  ;;  %1653 = vmatpush3.bf16.msra.mxu0 %v1735_v52  ;;  %v988_v26 = vrot.slane %v979_v14, %v987_v20 }
 0x4e3   :  { %1654 = vmatprep.subr.bf16.mxu0 %v1736_v54 }
 0x4e6   :  { %1655 = vmatpush3.bf16.msra.mxu0 %v1736_v54 }
 0x4e7   :  { %1660 = vmatprep.subr.bf16.mxu0 %v1737_v60 }
 0x4e9   :  { %1645 = vmatmul.mubr.msk.bf16.gmra.mrb[36].mxu0 %vm119_vm0, %v1720_v27 }
 0x5ac   :  { %v1638_v29 = vpop.f32.mrb[28].mxu0 }
 0x5ad   :  { %v918_v30 = vpop.f32.mrb[29].mxu0 }
 0x5ae   :  { %v1639_v31 = vpop.f32.mrb[30].mxu0 }
 0x5af   :  { %v966_v32 = vpack.c.bf16 %v1639_v31, %v1638_v29  ;;  %v921_v33 = vpop.f32.mrb[31].mxu0 }
 0x5b0   :  { %v965_v34 = vpack.c.bf16 %v921_v33, %v918_v30 }
 0x5b2   :  { %1472 = vmatmul.mubr.msk.bf16.vlgmr.msra.gmra.mrb[28].mxu1 %vm418_vm1, %v965_v34 }
 0x5b3   :  { %1089 = vmatprep.mubr.bf16.mxu1 %v1742_v28 }
 0x5b4   :  { %v1642_v35 = vpop.f32.mrb[32].mxu0 }
 0x5b5   :  { %v934_v36 = vpop.f32.mrb[33].mxu0 }
 0x5b6   :  { %v1643_v37 = vpop.f32.mrb[34].mxu0 }
 0x5b7   :  { %v968_v38 = vpack.c.bf16 %v1643_v37, %v1642_v35  ;;  %v937_v40 = vpop.f32.mrb[35].mxu0 }
 0x5b8   :  { %v967_v42 = vpack.c.bf16 %v937_v40, %v934_v36 }
 0x5ba   :  { %1473 = vmatmul.mubr.msk.bf16.gmra.mrb[32].mxu1 %vm418_vm1, %v966_v32 }
 0x5bb   :  { %1097 = vmatprep.mubr.bf16.mxu1 %v1742_v28 }
 0x5bc   :  { %v1646_v48 = vpop.f32.mrb[36].mxu0 }
 0x5bd   :  { %v950_v49 = vpop.f32.mrb[37].mxu0 }
 0x5be   :  { %v1647_v2 = vpop.f32.mrb[38].mxu0 }
 0x5bf   :  { %v970_v7 = vpack.c.bf16 %v1647_v2, %v1646_v48  ;;  %v953_v4 = vpop.f32.mrb[39].mxu0 }
 0x5c0   :  { %v969_v8 = vpack.c.bf16 %v953_v4, %v950_v49 }
 0x5c2   :  { %1474 = vmatmul.mubr.msk.bf16.gmra.mrb[36].mxu1 %vm418_vm1, %v967_v42 }
 0x5c3   :  { %1105 = vmatprep.mubr.bf16.mxu1 %v1742_v28 }
 0x5ca   :  { %1475 = vmatmul.mubr.msk.bf16.gmra.mrb[40].mxu1 %vm418_vm1, %v968_v38 }
 0x5cb   :  { %1113 = vmatprep.mubr.bf16.mxu1 %v1742_v28 }
 0x5d2   :  { %1476 = vmatmul.mubr.msk.bf16.gmra.mrb[44].mxu1 %vm418_vm1, %v969_v8 }
 0x5d3   :  { %1121 = vmatprep.mubr.bf16.mxu1 %v1742_v28 }
 0x5da   :  { %1477 = vmatmul.mubr.msk.bf16.gmra.mrb[48].mxu1 %vm418_vm1, %v970_v7 }
 0x685   :  { %v1083_v15 = vpop.f32.mrb[28].mxu1 }
 0x686   :  { %v1084_v39 = vadd.f32 %v1083_v15, %v984_v44  ;;  %v1085_v45 = vpop.f32.mrb[29].mxu1 }
 0x687   :  { %v1086_v41 = vpop.f32.mrb[30].mxu1 }
 0x688   :  { %v1087_v43 = vadd.f32 %v1086_v41, %v984_v44  ;;  %v1088_v6 = vpop.f32.mrb[31].mxu1  ;;  %v1130_v27 = vmax.f32 %v1084_v39, 0.0 }
 0x68a   :  { %v1131_v30 = vmax.f32 %v1087_v43, 0.0  ;;  %v1142_v34 = vadd.f32 %v1130_v27, %v2189_v18 }
 0x68c   :  { %v1143_v37 = vadd.f32 %v1131_v30, %v2192_v19 }
 0x68d   :  { %v1091_v46 = vpop.f32.mrb[32].mxu1 }
 0x68e   :  { %v1092_v47 = vadd.f32 %v1091_v46, %v984_v44  ;;  %v1093_v16 = vpop.f32.mrb[33].mxu1 }
 0x68f   :  { %v1094_v17 = vpop.f32.mrb[34].mxu1 }
 0x690   :  { %v1095_v50 = vadd.f32 %v1094_v17, %v984_v44  ;;  %v1096_v51 = vpop.f32.mrb[35].mxu1  ;;  %v1132_v42 = vmax.f32 %v1092_v47, 0.0  ;;  %v1740_v17 = vld [vmem:[%s2283_s4 + $0x9c] ss:$24 sps:$4 sm:$0xff]  }
 0x692   :  { %v1133_v7 = vmax.f32 %v1095_v50, 0.0  ;;  %v1144_v10 = vadd.f32 %v1132_v42, %v2197_v21  ;;  %v1738_v21 = vld [vmem:[%s2283_s4 + $0x3c] ss:$24 sps:$4 sm:$0xff]   ;;  %v1478_v50 = vld [vmem:[%s2284_s5 + $0x2] ss:$0 sm:$0xff] }
 0x694   :  { %v1145_v18 = vadd.f32 %v1133_v7, %v2186_v5  ;;  %v1739_v5 = vld [vmem:[%s2283_s4 + $0x6c] ss:$24 sps:$4 sm:$0xff]  }
 0x695   :  { %v1099_v53 = vpop.f32.mrb[36].mxu1 }
 0x696   :  { %v1100_v55 = vadd.f32 %v1099_v53, %v984_v44  ;;  %v1101_v0 = vpop.f32.mrb[37].mxu1 }
 0x697   :  { %v1102_v56 = vpop.f32.mrb[38].mxu1 }
 0x698   :  { %v1134_v1 = vmax.f32 %v1100_v55, 0.0  ;;  %v1103_v57 = vadd.f32 %v1102_v56, %v984_v44  ;;  %v1104_v58 = vpop.f32.mrb[39].mxu1 }
 0x69a   :  { %v1135_v59 = vmax.f32 %v1103_v57, 0.0  ;;  %1154 = vrot.lane.b32.xlu0 %v1134_v1, %s1743_s14 }
 0x69c   :  { %1156 = vrot.lane.b32.xlu1 %v1135_v59, %s1743_s14 }
 0x69d   :  { %v1107_v61 = vpop.f32.mrb[40].mxu1 }
 0x69e   :  { %v1108_v62 = vadd.f32 %v1107_v61, %v984_v44  ;;  %v1109_v63 = vpop.f32.mrb[41].mxu1 }
 0x69f   :  { %v1110_v3 = vpop.f32.mrb[42].mxu1  ;;  %v1485_v63 = vld [vmem:[%s2284_s5 + $0x3] ss:$0 sm:$0xff] }
 0x6a0   :  { %v1136_v22 = vmax.f32 %v1108_v62, 0.0  ;;  %v1111_v23 = vadd.f32 %v1110_v3, %v984_v44  ;;  %v1112_v24 = vpop.f32.mrb[43].mxu1 }
 0x6a2   :  { %v1137_v25 = vmax.f32 %v1111_v23, 0.0  ;;  %1158 = vrot.lane.b32.xlu0 %v1136_v22, %s1743_s14 }
 0x6a4   :  { %1160 = vrot.lane.b32.xlu1 %v1137_v25, %s1743_s14 }
 0x6a5   :  { %v1115_v28 = vpop.f32.mrb[44].mxu1 }
 0x6a6   :  { %v1116_v29 = vpop.f32.mrb[45].mxu1 }
 0x6a7   :  { %v1117_v31 = vadd.f32 %v1116_v29, %v988_v26  ;;  %v1118_v32 = vpop.f32.mrb[46].mxu1 }
 0x6a8   :  { %v1119_v33 = vpop.f32.mrb[47].mxu1 }
 0x6a9   :  { %v1138_v35 = vmax.f32 %v1117_v31, 0.0  ;;  %v1120_v36 = vadd.f32 %v1119_v33, %v988_v26 }
 0x6ab   :  { %v1139_v38 = vmax.f32 %v1120_v36, 0.0  ;;  %v1146_v40 = vadd.f32 %v1142_v34, %v1138_v35 }
 0x6ad   :  { %v1123_v48 = vpop.f32.mrb[48].mxu1  ;;  %v1147_v49 = vadd.f32 %v1143_v37, %v1139_v38 }
 0x6ae   :  { %v1124_v2 = vpop.f32.mrb[49].mxu1 }
 0x6af   :  { %v1125_v4 = vadd.f32 %v1124_v2, %v988_v26  ;;  %v1126_v8 = vpop.f32.mrb[50].mxu1 }
 0x6b0   :  { %v1127_v9 = vpop.f32.mrb[51].mxu1 }
 0x6b1   :  { %v1140_v11 = vmax.f32 %v1125_v4, 0.0  ;;  %v1128_v12 = vadd.f32 %v1127_v9, %v988_v26 }
 0x6b3   :  { %v1141_v13 = vmax.f32 %v1128_v12, 0.0  ;;  %v1148_v14 = vadd.f32 %v1144_v10, %v1140_v11 }
 0x6b5   :  { %v1149_v44 = vadd.f32 %v1145_v18, %v1141_v13 }
 0x70c   :  { %v1155_v19 = vpop.permute.xlu0 %1154 }
 0x70d   :  { %v1166_v39 = vadd.f32 %v1155_v19, %v1146_v40 }
 0x70e   :  { %v1157_v15 = vpop.permute.xlu1 %1156 }
 0x70f   :  { %v1167_v45 = vadd.f32 %v1157_v15, %v1147_v49 }
 0x711   :  { %v1170_v41 = vpack.c.bf16 %v1167_v45, %v1166_v39 }
 0x713   :  { %1656 = vmatprep.mubr.msk.bf16.mxu0 %vm418_vm1, %v1170_v41 }
 0x714   :  { %v1159_v43 = vpop.permute.xlu0 %1158 }
 0x715   :  { %v1168_v46 = vadd.f32 %v1159_v43, %v1148_v14 }
 0x716   :  { %v1161_v6 = vpop.permute.xlu1 %1160 }
 0x717   :  { %v1169_v47 = vadd.f32 %v1161_v6, %v1149_v44 }
 0x719   :  { %v1171_v16 = vpack.c.bf16 %v1169_v47, %v1168_v46 }
 0x71b   :  { %1657 = vmatmul.mubr.msk.bf16.vlgmr.msra.gmra.mrb[40].mxu0 %vm418_vm1, %v1171_v16 }
 0x71c   :  { %1661 = vmatpush3.bf16.msra.mxu0 %v1737_v60 }
 0x71d   :  { %1662 = vmatprep.subr.bf16.mxu0 %v1738_v21 }
 0x720   :  { %1663 = vmatpush3.bf16.msra.mxu0 %v1738_v21 }
 0x721   :  { %1664 = vmatprep.subr.bf16.mxu0 %v1739_v5 }
 0x724   :  { %1665 = vmatpush3.bf16.msra.mxu0 %v1739_v5 }
 0x725   :  { %1666 = vmatprep.subr.bf16.mxu0 %v1740_v17 }
 0x728   :  { %1667 = vmatpush3.bf16.msra.mxu0 %v1740_v17 }
 0x7ee   :  { %v1658_v51 = vpop.f32.mrb[40].mxu0 }
 0x7ef   :  { %v1260_v52 = vadd.f32 %v1658_v51, %v1478_v50  ;;  %v1251_v53 = vpop.f32.mrb[41].mxu0 }
 0x7f0   :  { %v1252_v54 = vadd.f32 %v1478_v50, %v1251_v53  ;;  %v1659_v55 = vpop.f32.mrb[42].mxu0 }
 0x7f1   :  { %v1263_v0 = vadd.f32 %v1659_v55, %v1478_v50  ;;  %v1254_v56 = vpop.f32.mrb[43].mxu0  ;;  %v1268_v57 = vmax.f32 %v1260_v52, 0.0 }
 0x7f2   :  { %v1255_v1 = vadd.f32 %v1478_v50, %v1254_v56  ;;  %v1266_v59 = vmax.f32 %v1252_v54, 0.0 }
 0x7f3   :  { %v1269_v58 = vmax.f32 %v1263_v0, 0.0 }
 0x7f4   :  { %v1267_v60 = vmax.f32 %v1255_v1, 0.0 }
 0x7f5   :  { %v1271_v61 = vpack.c.bf16 %v1269_v58, %v1268_v57 }
 0x7f6   :  { %v1270_v62 = vpack.c.bf16 %v1267_v60, %v1266_v59 }
 0x7f8   :  { %1668 = vmatprep.mubr.msk.bf16.mxu0 %vm418_vm1, %v1270_v62 }
 0x7f9   :  { %1669 = vmatmul.mubr.msk.bf16.vlgmr.msra.gmra.mrb[44].mxu0 %vm418_vm1, %v1271_v61 }
 0x8cc   :  { %v1670_v3 = vpop.f32.mrb[44].mxu0 }
 0x8cd   :  { %v1360_v20 = vadd.f32 %v1670_v3, %v1485_v63  ;;  %v1351_v22 = vpop.f32.mrb[45].mxu0 }
 0x8ce   :  { %v1352_v23 = vadd.f32 %v1485_v63, %v1351_v22  ;;  %v1671_v24 = vpop.f32.mrb[46].mxu0 }
 0x8cf   :  { %1368 = vst [vmem:[%s2286_s6 + $0x10] sm:$0xff] %v1360_v20  ;;  %v1363_v25 = vadd.f32 %v1671_v24, %v1485_v63  ;;  %v1354_v26 = vpop.f32.mrb[47].mxu0 }
 0x8d0   :  { %1366 = vst [vmem:[%s2286_s6] sm:$0xff] %v1352_v23  ;;  %v1355_v27 = vadd.f32 %v1485_v63, %v1354_v26 }
 0x8d1   :  { %1369 = vst [vmem:[%s2286_s6 + $0x18] sm:$0xff] %v1363_v25 }
 0x8d2   :  { %1367 = vst [vmem:[%s2286_s6 + $0x8] sm:$0xff] %v1355_v27 }

</bundles_post_ra>
